<compile_context>
chip_gen: v7x
topology: tpu7x:2x2x1
jax: 0.10.0
libtpu: 0.0.40
codegen_flags: <defaults>
</compile_context>

<pallas_src>
import functools

import jax
import jax.numpy as jnp
from jax import lax
from jax.experimental import pallas as pl
from jax.experimental.pallas import tpu as pltpu


def _conv_encoder_kernel(x_ref, w_ref, b_ref, o_ref):
    """One (batch, row-tile) output block per grid step.

    x_ref: (Hp, WpFp)      padded input rows for this batch element, bf16
    w_ref: (K, WpFp, WE)   Toeplitz-expanded conv weights (constant), bf16
    b_ref: (1, WE)         bias tiled across W, f32
    o_ref: (TH, WE)        LeakyReLU(conv + bias), f32 (lane-dense, WE % 128 == 0)
    """
    th, we = o_ref.shape
    k = w_ref.shape[0]

    m = pl.program_id(1)
    row0 = pl.multiple_of(m * th, th)            # 8-aligned dynamic row offset

    # One aligned load of the TH + K - 1 input rows this tile needs (halo incl.);
    # the per-tap shifts below are static value slices.
    xs = x_ref[pl.ds(row0, th + k - 1), :]       # (TH+K-1, WpFp) bf16

    acc = jnp.zeros((th, we), jnp.float32)
    for dy in range(k):                          # static unroll: K MXU matmuls
        acc = acc + jnp.dot(xs[dy:dy + th, :], w_ref[dy],
                            preferred_element_type=jnp.float32)
    acc = acc + b_ref[...]                       # bias added once per tile
    o_ref[...] = jnp.where(acc > 0, acc, 0.01 * acc)   # LeakyReLU(0.01)


def _build_toeplitz_weights(w_hwio, width, pad):
    """Expand (K, K, F, E) HWIO weights to (K, Wp*F, W*E) W-direction Toeplitz.

    w_big[dy, wp*F + f, w*E + e] = w[dy, wp - w, f, e]  if 0 <= wp - w < K else 0
    """
    K, _, F, E = w_hwio.shape
    Wp = width + 2 * pad
    wp_idx = jnp.arange(Wp)[:, None]                  # (Wp, 1)
    w_idx = jnp.arange(width)[None, :]                # (1, W)
    dx = wp_idx - w_idx                               # (Wp, W)
    valid = (dx >= 0) & (dx < K)
    dx_c = jnp.clip(dx, 0, K - 1)
    g = w_hwio[:, dx_c, :, :]                         # (K, Wp, W, F, E)
    g = jnp.where(valid[None, :, :, None, None], g, 0.0)
    g = jnp.transpose(g, (0, 1, 3, 2, 4))             # (K, Wp, F, W, E)
    return g.reshape(K, Wp * F, width * E)


def _pick_row_tile(h):
    """Multiple-of-8 divisor of H giving >= 2 row tiles (pipeline overlap)."""
    for th in (32, 16, 8):
        if h % th == 0 and h // th >= 2:
            return th
    return h                                          # full extent (always legal)


@functools.partial(jax.jit, static_argnames=("kernel_size",))
def conv_encoder_forward(x, w, b, *, kernel_size=5):
    """JAX/Pallas equivalent of ConvEncoder.forward.

    x: (B, H, W, F) or (H, W, F); w: (K, K, F, E) HWIO; b: (E,)
    returns (B, H*W, E) or (H*W, E), float32.
    """
    squeeze = False
    if x.ndim == 3:
        x = x[None]
        squeeze = True

    B, H, W, F = x.shape
    K = kernel_size
    E = w.shape[-1]
    assert K % 2 == 1, "ConvEncoder 'same' semantics require odd kernel_size"
    pad = K // 2
    Hp, Wp = H + 2 * pad, W + 2 * pad
    WE = W * E

    # --- operands (bf16 for MXU; f32 accumulation happens in-kernel) --------
    x_pad = jnp.pad(x.astype(jnp.bfloat16),
                    ((0, 0), (pad, pad), (pad, pad), (0, 0)))
    x2d = x_pad.reshape(B, Hp, Wp * F)                # free row-major view
    WpF = Wp * F
    WpFp = ((WpF + 127) // 128) * 128                 # lane-align the contraction
    if WpFp != WpF:
        x2d = jnp.pad(x2d, ((0, 0), (0, 0), (0, WpFp - WpF)))

    w_big = _build_toeplitz_weights(w.astype(jnp.float32), W, pad)
    if WpFp != WpF:
        w_big = jnp.pad(w_big, ((0, 0), (0, WpFp - WpF), (0, 0)))
    w_big = w_big.astype(jnp.bfloat16)                # (K, WpFp, WE)
    b_big = jnp.tile(b.astype(jnp.float32), W).reshape(1, WE)

    TH = _pick_row_tile(H)
    grid = (B, H // TH)

    out = pl.pallas_call(
        _conv_encoder_kernel,
        out_shape=jax.ShapeDtypeStruct((B, H, WE), jnp.float32),
        grid_spec=pltpu.PrefetchScalarGridSpec(
            num_scalar_prefetch=0,
            grid=grid,
            in_specs=[
                # input block depends only on b -> DMA'd once per batch element
                pl.BlockSpec((None, Hp, WpFp), lambda bb, mm: (bb, 0, 0)),
                # weights + bias constant -> DMA'd once total
                pl.BlockSpec((K, WpFp, WE), lambda bb, mm: (0, 0, 0)),
                pl.BlockSpec((1, WE), lambda bb, mm: (0, 0)),
            ],
            out_specs=pl.BlockSpec((None, TH, WE), lambda bb, mm: (bb, mm, 0)),
        ),
        compiler_params=pltpu.CompilerParams(
            dimension_semantics=("parallel", "parallel"),
            vmem_limit_bytes=32 * 1024 * 1024,
        ),
    )(x2d, w_big, b_big)

    out = out.reshape(B, H * W, E)                    # free view: (h, w*E+e) -> (h*W+w, e)
    if squeeze:
        out = out[0]
    return out


def init_conv_encoder_params(key, feature_size, embed_size, kernel_size=5):
    """Kaiming-normal-style init (nonlinearity='leaky_relu', a=0); zero bias."""
    K, F, E = kernel_size, feature_size, embed_size
    fan_in = F * K * K
    std = (2.0 ** 0.5) / (fan_in ** 0.5)
    w = std * jax.random.normal(key, (K, K, F, E), dtype=jnp.float32)  # HWIO
    b = jnp.zeros((E,), dtype=jnp.float32)
    return w, b


def _reference_forward(x, w, b):
    """Pure-JAX (XLA, f32) reference for correctness checking."""
    squeeze = False
    if x.ndim == 3:
        x = x[None]
        squeeze = True
    B, H, W, F = x.shape
    E = w.shape[-1]
    y = lax.conv_general_dilated(
        x.astype(jnp.float32), w.astype(jnp.float32),
        window_strides=(1, 1), padding="SAME",
        dimension_numbers=("NHWC", "HWIO", "NHWC"),
        precision=lax.Precision.HIGHEST)
    y = y + b.reshape(1, 1, 1, E)
    y = jnp.where(y > 0, y, 0.01 * y)
    y = y.reshape(B, H * W, E)
    if squeeze:
        y = y[0]
    return y


if __name__ == "__main__":
    # Small shapes consistent with the module: batch=2, spatial=16x16,
    # feature_size=4, embed_size=32, kernel_size=5.
    B, H, W = 2, 16, 16
    feature_size, embed_size, kernel_size = 4, 32, 5

    root = jax.random.PRNGKey(0)
    k_x, k_w, k_b = jax.random.split(root, 3)
    x = jax.random.normal(k_x, (B, H, W, feature_size), dtype=jnp.float32)
    w, b = init_conv_encoder_params(k_w, feature_size, embed_size, kernel_size)
    # Module inits bias to 0; use a small non-zero bias here to exercise the path.
    b = 0.1 * jax.random.normal(k_b, (embed_size,), dtype=jnp.float32)

    out = jax.block_until_ready(
        conv_encoder_forward(x, w, b, kernel_size=kernel_size))

    # Reference on bf16-rounded operands (the kernel feeds the MXU bf16 and
    # accumulates in f32, so this isolates kernel correctness from quantization).
    xq = x.astype(jnp.bfloat16).astype(jnp.float32)
    wq = w.astype(jnp.bfloat16).astype(jnp.float32)
    ref = _reference_forward(xq, wq, b)

    assert out.shape == (B, H * W, embed_size), out.shape
    assert out.dtype == jnp.float32
    assert jnp.allclose(out, ref, rtol=1e-2, atol=1e-2), (
        float(jnp.max(jnp.abs(out - ref))))

    # Also exercise the 3-D (unbatched) input path.
    out3 = jax.block_until_ready(
        conv_encoder_forward(x[0], w, b, kernel_size=kernel_size))
    assert out3.shape == (H * W, embed_size)
    assert jnp.allclose(out3, ref[0], rtol=1e-2, atol=1e-2)

    print("KERNEL_OK")
</pallas_src>

<mosaic_0001>
module attributes {stable_mosaic.version = 11 : i64} {
  func.func @_conv_encoder_kernel(%arg0: i32, %arg1: i32, %arg2: memref<1x20x128xbf16, #tpu.memory_space<vmem>>, %arg3: memref<5x128x512xbf16, #tpu.memory_space<vmem>>, %arg4: memref<1x512xf32, #tpu.memory_space<vmem>>, %arg5: memref<1x8x512xf32, #tpu.memory_space<vmem>>) attributes {dimension_semantics = [#tpu.dimension_semantics<parallel>, #tpu.dimension_semantics<parallel>], iteration_bounds = array<i64: 2, 2>, scalar_prefetch = 0 : i64, scratch_operands = 0 : i64, tpu.core_type = #tpu.core_type<tc>, window_params = [{transform_indices = @transform_0, window_bounds = array<i64: 1, 20, 128>}, {pipeline_mode = #tpu.pipeline_mode<synchronous>, transform_indices = @transform_1, window_bounds = array<i64: 5, 128, 512>}, {pipeline_mode = #tpu.pipeline_mode<synchronous>, transform_indices = @transform_2, window_bounds = array<i64: 1, 512>}, {transform_indices = @transform_3, window_bounds = array<i64: 1, 8, 512>}]} {
    %c8_i32 = arith.constant 8 : i32
    %0 = arith.muli %arg1, %c8_i32 : i32
    %1 = tpu.assume_multiple %0, 8 : i32
    %c0 = arith.constant 0 : index
    %2 = arith.index_cast %1 : i32 to index
    %c0_0 = arith.constant 0 : index
    %3 = vector.load %arg2[%c0, %2, %c0_0] : memref<1x20x128xbf16, #tpu.memory_space<vmem>>, vector<1x12x128xbf16>
    %4 = vector.shape_cast %3 : vector<1x12x128xbf16> to vector<12x128xbf16>
    %cst = arith.constant 0.000000e+00 : f32
    %5 = vector.broadcast %cst : f32 to vector<8x512xf32>
    %6 = vector.extract_strided_slice %4 {offsets = [0, 0], sizes = [8, 128], strides = [1, 1]} : vector<12x128xbf16> to vector<8x128xbf16>
    %c0_1 = arith.constant 0 : index
    %c0_2 = arith.constant 0 : index
    %c0_3 = arith.constant 0 : index
    %7 = vector.load %arg3[%c0_1, %c0_2, %c0_3] : memref<5x128x512xbf16, #tpu.memory_space<vmem>>, vector<1x128x512xbf16>
    %8 = vector.shape_cast %7 : vector<1x128x512xbf16> to vector<128x512xbf16>
    %cst_4 = arith.constant dense<0.000000e+00> : vector<8x512xf32>
    %9 = tpu.matmul %6, %8, %cst_4 {dimension_numbers = #tpu.dot_dimension_numbers<[1], [0], [0], [1], [0, 0, 1, 1], [], []>} : vector<8x128xbf16>, vector<128x512xbf16>, vector<8x512xf32> -> vector<8x512xf32>
    %10 = arith.addf %5, %9 : vector<8x512xf32>
    %11 = vector.extract_strided_slice %4 {offsets = [1, 0], sizes = [8, 128], strides = [1, 1]} : vector<12x128xbf16> to vector<8x128xbf16>
    %c1 = arith.constant 1 : index
    %c0_5 = arith.constant 0 : index
    %c0_6 = arith.constant 0 : index
    %12 = vector.load %arg3[%c1, %c0_5, %c0_6] : memref<5x128x512xbf16, #tpu.memory_space<vmem>>, vector<1x128x512xbf16>
    %13 = vector.shape_cast %12 : vector<1x128x512xbf16> to vector<128x512xbf16>
    %cst_7 = arith.constant dense<0.000000e+00> : vector<8x512xf32>
    %14 = tpu.matmul %11, %13, %cst_7 {dimension_numbers = #tpu.dot_dimension_numbers<[1], [0], [0], [1], [0, 0, 1, 1], [], []>} : vector<8x128xbf16>, vector<128x512xbf16>, vector<8x512xf32> -> vector<8x512xf32>
    %15 = arith.addf %10, %14 : vector<8x512xf32>
    %16 = vector.extract_strided_slice %4 {offsets = [2, 0], sizes = [8, 128], strides = [1, 1]} : vector<12x128xbf16> to vector<8x128xbf16>
    %c2 = arith.constant 2 : index
    %c0_8 = arith.constant 0 : index
    %c0_9 = arith.constant 0 : index
    %17 = vector.load %arg3[%c2, %c0_8, %c0_9] : memref<5x128x512xbf16, #tpu.memory_space<vmem>>, vector<1x128x512xbf16>
    %18 = vector.shape_cast %17 : vector<1x128x512xbf16> to vector<128x512xbf16>
    %cst_10 = arith.constant dense<0.000000e+00> : vector<8x512xf32>
    %19 = tpu.matmul %16, %18, %cst_10 {dimension_numbers = #tpu.dot_dimension_numbers<[1], [0], [0], [1], [0, 0, 1, 1], [], []>} : vector<8x128xbf16>, vector<128x512xbf16>, vector<8x512xf32> -> vector<8x512xf32>
    %20 = arith.addf %15, %19 : vector<8x512xf32>
    %21 = vector.extract_strided_slice %4 {offsets = [3, 0], sizes = [8, 128], strides = [1, 1]} : vector<12x128xbf16> to vector<8x128xbf16>
    %c3 = arith.constant 3 : index
    %c0_11 = arith.constant 0 : index
    %c0_12 = arith.constant 0 : index
    %22 = vector.load %arg3[%c3, %c0_11, %c0_12] : memref<5x128x512xbf16, #tpu.memory_space<vmem>>, vector<1x128x512xbf16>
    %23 = vector.shape_cast %22 : vector<1x128x512xbf16> to vector<128x512xbf16>
    %cst_13 = arith.constant dense<0.000000e+00> : vector<8x512xf32>
    %24 = tpu.matmul %21, %23, %cst_13 {dimension_numbers = #tpu.dot_dimension_numbers<[1], [0], [0], [1], [0, 0, 1, 1], [], []>} : vector<8x128xbf16>, vector<128x512xbf16>, vector<8x512xf32> -> vector<8x512xf32>
    %25 = arith.addf %20, %24 : vector<8x512xf32>
    %26 = vector.extract_strided_slice %4 {offsets = [4, 0], sizes = [8, 128], strides = [1, 1]} : vector<12x128xbf16> to vector<8x128xbf16>
    %c4 = arith.constant 4 : index
    %c0_14 = arith.constant 0 : index
    %c0_15 = arith.constant 0 : index
    %27 = vector.load %arg3[%c4, %c0_14, %c0_15] : memref<5x128x512xbf16, #tpu.memory_space<vmem>>, vector<1x128x512xbf16>
    %28 = vector.shape_cast %27 : vector<1x128x512xbf16> to vector<128x512xbf16>
    %cst_16 = arith.constant dense<0.000000e+00> : vector<8x512xf32>
    %29 = tpu.matmul %26, %28, %cst_16 {dimension_numbers = #tpu.dot_dimension_numbers<[1], [0], [0], [1], [0, 0, 1, 1], [], []>} : vector<8x128xbf16>, vector<128x512xbf16>, vector<8x512xf32> -> vector<8x512xf32>
    %30 = arith.addf %25, %29 : vector<8x512xf32>
    %c0_17 = arith.constant 0 : index
    %c0_18 = arith.constant 0 : index
    %31 = vector.load %arg4[%c0_17, %c0_18] : memref<1x512xf32, #tpu.memory_space<vmem>>, vector<1x512xf32>
    %32 = vector.broadcast %31 : vector<1x512xf32> to vector<8x512xf32>
    %33 = arith.addf %30, %32 : vector<8x512xf32>
    %cst_19 = arith.constant 0.000000e+00 : f32
    %34 = vector.broadcast %cst_19 : f32 to vector<8x512xf32>
    %35 = arith.cmpf ogt, %33, %34 : vector<8x512xf32>
    %cst_20 = arith.constant 0.00999999977 : f32
    %36 = vector.broadcast %cst_20 : f32 to vector<8x512xf32>
    %37 = arith.mulf %36, %33 : vector<8x512xf32>
    %38 = arith.select %35, %33, %37 : vector<8x512xi1>, vector<8x512xf32>
    %c0_21 = arith.constant 0 : index
    %c0_22 = arith.constant 0 : index
    %c0_23 = arith.constant 0 : index
    %39 = vector.load %arg5[%c0_21, %c0_22, %c0_23] : memref<1x8x512xf32, #tpu.memory_space<vmem>>, vector<1x8x512xf32>
    %40 = vector.shape_cast %39 : vector<1x8x512xf32> to vector<8x512xf32>
    %41 = vector.shape_cast %38 : vector<8x512xf32> to vector<1x8x512xf32>
    tpu.vector_store %arg5[%c0_21, %c0_22, %c0_23], %41 {strides = array<i32>} : memref<1x8x512xf32, #tpu.memory_space<vmem>>, vector<1x8x512xf32>,
    return
  }
  func.func @transform_0(%arg0: i32, %arg1: i32) -> (i32, i32, i32) {
    %c0_i32 = arith.constant 0 : i32
    %c0_i32_0 = arith.constant 0 : i32
    %c0_i32_1 = arith.constant 0 : i32
    return %arg0, %c0_i32, %c0_i32_0 : i32, i32, i32
  }
  func.func @transform_1(%arg0: i32, %arg1: i32) -> (i32, i32, i32) {
    %c0_i32 = arith.constant 0 : i32
    %c0_i32_0 = arith.constant 0 : i32
    %c0_i32_1 = arith.constant 0 : i32
    %c0_i32_2 = arith.constant 0 : i32
    return %c0_i32, %c0_i32_0, %c0_i32_1 : i32, i32, i32
  }
  func.func @transform_2(%arg0: i32, %arg1: i32) -> (i32, i32) {
    %c0_i32 = arith.constant 0 : i32
    %c0_i32_0 = arith.constant 0 : i32
    %c0_i32_1 = arith.constant 0 : i32
    return %c0_i32, %c0_i32_0 : i32, i32
  }
  func.func @transform_3(%arg0: i32, %arg1: i32) -> (i32, i32, i32) {
    %c0_i32 = arith.constant 0 : i32
    %c0_i32_0 = arith.constant 0 : i32
    return %arg0, %arg1, %c0_i32 : i32, i32, i32
  }
}

</mosaic_0001>

<bundles_post_ra>
// kernel: tile.8
= control target key start
LH: loop header
LB: loop body
LE: loop exit
PB: predicated region body
PF: predicated region fallthrough
CT: control target
= control target key end

     0   :  { %s28_s0 = inlined_call_operand.vmem [shape: f32[32], index: 0, kind: input, shape index: {}]   ;;  %s29_s1 = inlined_call_operand.vmem [shape: f32[16,32], index: 1, kind: output, shape index: {}]  }
   0x1   :  { %v4_v0 = vld [vmem:[%s28_s0] ss:$0 sm:$0xff] }
   0x2   :  { %5 = vst [vmem:[%s29_s1] sm:$0xff] %v4_v0  ;;  %8 = vst [vmem:[%s29_s1 + $0x8] sm:$0xff] %v4_v0 }

// kernel: tile.9
= control target key start
LH: loop header
LB: loop body
LE: loop exit
PB: predicated region body
PF: predicated region fallthrough
CT: control target
= control target key end

     0   :  { %s57_s8 = smov 96   ;;  %vm3_vm0 = vcmask 261120   ;;  %s59_s15 = smov 64   ;;  %vm9_vm1 = vcmask 1048320   ;;  %vm15_vm2 = vcmask 785920   ;;  %vm21_vm3 = vcmask 523520   ;;  %s94_s0 = inlined_call_operand.vmem [shape: f32[16,32], index: 0, kind: input, shape index: {}]   ;;  %s95_s1 = inlined_call_operand.vmem [shape: f32[1,512], index: 1, kind: output, shape index: {}]  }
   0x1   :  { %v48_v0 = vld [vmem:[%s94_s0 + $0x3] ss:$4 sm:$0xf]   ;;  %v49_v1 = vld [vmem:[%s94_s0 + $0x2] ss:$4 sm:$0xf]  }
   0x2   :  { %7 = vrot.lane.b32.xlu0 %v48_v0, %s57_s8  ;;  %v50_v2 = vld [vmem:[%s94_s0 + $0x1] ss:$4 sm:$0xf]   ;;  %v2_v3 = vld [vmem:[%s94_s0] ss:$4 sm:$0xf]  }
   0x3   :  { %s58_s0 = smov 32   ;;  %4 = vst.msk [vmem:[#allocation0] ss:$8 sm:$0xf] %vm3_vm0, %v2_v3  }
   0x4   :  { %19 = vrot.lane.b32.xlu1 %v50_v2, %s58_s0 }
   0x6   :  { %13 = vrot.lane.b32.xlu0 %v49_v1, %s59_s15 }
  0x74   :  { %v8_v4 = vpop.permute.xlu0 %7  }
  0x75   :  { %10 = vst.msk [vmem:[#allocation0] ss:$8 sm:$0xf] %vm9_vm1, %v8_v4  }
  0x76   :  { %v20_v5 = vpop.permute.xlu1 %19  }
  0x78   :  { %v14_v6 = vpop.permute.xlu0 %13  }
  0x79   :  { %16 = vst.msk [vmem:[#allocation0] ss:$8 sm:$0xf] %vm15_vm2, %v14_v6  }
  0x7a   :  { %22 = vst.msk [vmem:[#allocation0] ss:$8 sm:$0xf] %vm21_vm3, %v20_v5  }
  0x81   :  { %v26_v7 = vld [vmem:[#allocation0] sm:$0x1]  ;;  %v30_v8 = vld [vmem:[#allocation0 + $0x8] sm:$0x1]  ;;  %v35_v9 = vld [vmem:[#allocation0 + $0x10] sm:$0x1] }
  0x82   :  { %28 = vst [vmem:[%s95_s1] sm:$0x1] %v26_v7  ;;  %51 = vst [vmem:[%s95_s1 + $0x1] sm:$0x1] %v30_v8  ;;  %v41_v10 = vld [vmem:[#allocation0 + $0x18] sm:$0x1] }
  0x83   :  { %52 = vst [vmem:[%s95_s1 + $0x2] sm:$0x1] %v35_v9  ;;  %53 = vst [vmem:[%s95_s1 + $0x3] sm:$0x1] %v41_v10 }

// kernel: conv_encoder_forward.1
= control target key start
LH: loop header
LB: loop body
LE: loop exit
PB: predicated region body
PF: predicated region fallthrough
CT: control target
= control target key end

     0   :  { %s2384_s12 = smov 0   ;;  %s2386_s13 = smov 0   ;;  %s2956_s0 = inlined_call_operand.vmem [shape: bf16[2,20,128], index: 0, kind: input, shape index: {}]   ;;  %s2957_s1 = inlined_call_operand.vmem [shape: bf16[5,128,512], index: 1, kind: input, shape index: {}]   ;;  %s2958_s2 = inlined_call_operand.vmem [shape: f32[1,512], index: 2, kind: input, shape index: {}]   ;;  %s2959_s3 = inlined_call_operand.vmem [shape: f32[2,16,512], index: 3, kind: output, shape index: {}]  }
   0x1   :  { %s2388_s14 = smov 0   ;;  %s2390_s15 = smov 0  }
   0x2   :  { %s2392_s16 = smov 0  }
   0x3 LB: > { %s22_s17 = sadd.s32 1, %s2353_s14  ;;  %s25_s18 = sadd.s32 1, %s2357_s15  ;;  %s2361_s16 = sphi %s2392_s16, %s13_s16   ;;  %s2357_s15 = sphi %s2390_s15, %s2963_s15   ;;  %s2353_s14 = sphi %s2388_s14, %s2962_s14   ;;  %s2349_s13 = sphi %s2386_s13, %s2961_s13   ;;  %s2345_s12 = sphi %s2384_s12, %s2960_s12  }
   0x4   : > { %p23_p0 = scmp.ge.s32.totalorder %s22_s17, 2  ;;  %p1742_p1 = scmp.ge.s32.totalorder %s2361_s16, 1 }
   0x5   : > { %p151_p2 = scmp.lt.s32.totalorder %s2361_s16, 5 }
   0x6   : > { %s2965_s17 = smov (%p23_p0, %s22_s17), 0  ;;  %s2967_s18 = smov (!%p23_p0, %s25_s18), %s2357_s15 }
   0x7   : > { %p152_p3 = pnand %p1742_p1, %p151_p2  ;;  %p27_p4 = scmp.ge.s32.totalorder %s2967_s18, 2 }
   0x8   : > { %v2082_v0 = vld [vmem:[%s2957_s1 + $0x104] ss:$16 sps:$4 sm:$0xff] (!%p152_p3)   ;;  %v2084_v1 = vld [vmem:[%s2957_s1 + $0x10c] ss:$16 sps:$4 sm:$0xff] (!%p152_p3)   ;;  %v2363_v2 = vmov (!%p152_p3), 0   ;;  %p179_p5 = scmp.lt.s32.totalorder (!%p152_p3), %s2349_s13, 1 }
   0x9   : > { %s2969_s18 = smov (%p27_p4, %s2967_s18), 0  ;;  %155 = sbr.rel (%p152_p3) target bundleno = 392 (0x188), region = 32 }
   0xa   : > { %471 = vmatprep.mubr.bf16.mxu0 (!%p152_p3), %v2363_v2  ;;  %512 = vmatprep.mubr.bf16.mxu1 (!%p152_p3), %v2363_v2  ;;  %v2086_v3 = vld [vmem:[%s2957_s1 + $0x100] ss:$16 sps:$4 sm:$0xff] (!%p152_p3)   ;;  %v2087_v4 = vld [vmem:[%s2957_s1 + $0x108] ss:$16 sps:$4 sm:$0xff] (!%p152_p3)   ;;  %v2088_v5 = vld [vmem:[%s2957_s1 + $0x124] ss:$16 sps:$4 sm:$0xff] (!%p152_p3)  }
   0xb   : > { %439 = vmatprep.subr.bf16.mxu0 (!%p152_p3), %v2082_v0  ;;  %480 = vmatprep.subr.bf16.mxu1 (!%p152_p3), %v2084_v1  ;;  %v2090_v6 = vld [vmem:[%s2957_s1 + $0x12c] ss:$16 sps:$4 sm:$0xff] (!%p152_p3)   ;;  %v2092_v7 = vld [vmem:[%s2957_s1 + $0x120] ss:$16 sps:$4 sm:$0xff] (!%p152_p3)   ;;  %v2093_v8 = vld [vmem:[%s2957_s1 + $0x128] ss:$16 sps:$4 sm:$0xff] (!%p152_p3)  }
   0xc   : > { %440 = vmatpush1.bf16.msra.mxu0 (!%p152_p3), %v2086_v3  ;;  %481 = vmatpush1.bf16.msra.mxu1 (!%p152_p3), %v2087_v4  ;;  %v2094_v9 = vld [vmem:[%s2957_s1 + $0x144] ss:$16 sps:$4 sm:$0xff] (!%p152_p3)   ;;  %v2096_v10 = vld [vmem:[%s2957_s1 + $0x14c] ss:$16 sps:$4 sm:$0xff] (!%p152_p3)   ;;  %v2098_v11 = vld [vmem:[%s2957_s1 + $0x140] ss:$16 sps:$4 sm:$0xff] (!%p152_p3)  }
   0xd   : > { %441 = vmatprep.subr.bf16.mxu0 (!%p152_p3), %v2088_v5  ;;  %482 = vmatprep.subr.bf16.mxu1 (!%p152_p3), %v2090_v6  ;;  %v2099_v12 = vld [vmem:[%s2957_s1 + $0x148] ss:$16 sps:$4 sm:$0xff] (!%p152_p3)   ;;  %v2100_v13 = vld [vmem:[%s2957_s1 + $0x164] ss:$16 sps:$4 sm:$0xff] (!%p152_p3)   ;;  %v2102_v14 = vld [vmem:[%s2957_s1 + $0x16c] ss:$16 sps:$4 sm:$0xff] (!%p152_p3)  }
   0xe   : > { %s1747_s27 = sshll.u32 (!%p152_p3), %s2345_s12, 3  ;;  %v2104_v15 = vld [vmem:[%s2957_s1 + $0x160] ss:$16 sps:$4 sm:$0xff] (!%p152_p3)   ;;  %v2105_v16 = vld [vmem:[%s2957_s1 + $0x168] ss:$16 sps:$4 sm:$0xff] (!%p152_p3)   ;;  %p186_p6 = scmp.lt.s32.totalorder (!%p152_p3), %s2345_s12, 1 }
   0xf   : > { %v2106_v17 = vld [vmem:[%s2957_s1 + $0x184] ss:$16 sps:$4 sm:$0xff] (!%p152_p3)   ;;  %s195_s8 = sshra.s32 (!%p152_p3), %s1747_s27, 3  ;;  %v2108_v18 = vld [vmem:[%s2957_s1 + $0x18c] ss:$16 sps:$4 sm:$0xff] (!%p152_p3)  }
  0x10   : > { %s2971_s13 = smov (!%p179_p5, %s2349_s13), 1  ;;  %442 = vmatpush1.bf16.msra.mxu0 %v2092_v7  ;;  %483 = vmatpush1.bf16.msra.mxu1 %v2093_v8  ;;  %v2110_v19 = vld [vmem:[%s2957_s1 + $0x180] ss:$16 sps:$4 sm:$0xff]   ;;  %v2111_v20 = vld [vmem:[%s2957_s1 + $0x188] ss:$16 sps:$4 sm:$0xff]   ;;  %s1748_s25 = sshll.u32 %s195_s8, 2 }
  0x11   : > { %443 = vmatprep.subr.bf16.mxu0 %v2094_v9  ;;  %484 = vmatprep.subr.bf16.mxu1 %v2096_v10  ;;  %s2040_s30 = smul.u32 12, %s2971_s13  ;;  %v2112_v21 = vld [vmem:[%s2957_s1 + $0x1a4] ss:$16 sps:$4 sm:$0xff]   ;;  %v2114_v22 = vld [vmem:[%s2957_s1 + $0x1ac] ss:$16 sps:$4 sm:$0xff]   ;;  %s2973_s12 = smov (!%p186_p6, %s2345_s12), 1 }
  0x12   : > { %v2116_v23 = vld [vmem:[%s2957_s1 + $0x1a0] ss:$16 sps:$4 sm:$0xff]   ;;  %v2117_v24 = vld [vmem:[%s2957_s1 + $0x1a8] ss:$16 sps:$4 sm:$0xff]   ;;  %v2118_v25 = vld [vmem:[%s2957_s1 + $0x1c4] ss:$16 sps:$4 sm:$0xff]  }
  0x13   : > { %s183_s24 = scalar_lea.vmem %s2956_s0, %s2040_s30  ;;  %v2120_v26 = vld [vmem:[%s2957_s1 + $0x1cc] ss:$16 sps:$4 sm:$0xff]   ;;  %v2122_v30 = vld [vmem:[%s2957_s1 + $0x1c0] ss:$16 sps:$4 sm:$0xff]   ;;  %v2123_v31 = vld [vmem:[%s2957_s1 + $0x1c8] ss:$16 sps:$4 sm:$0xff]  }
  0x14   : > { %444 = vmatpush1.bf16.msra.mxu0 %v2098_v11  ;;  %485 = vmatpush1.bf16.msra.mxu1 %v2099_v12  ;;  %s198_s4 = scalar_lea.vmem %s183_s24, %s1748_s25  ;;  %v2124_v32 = vld [vmem:[%s2957_s1 + $0x1e4] ss:$16 sps:$4 sm:$0xff]   ;;  %v2126_v35 = vld [vmem:[%s2957_s1 + $0x1ec] ss:$16 sps:$4 sm:$0xff]   ;;  %v2128_v37 = vld [vmem:[%s2957_s1 + $0x1e0] ss:$16 sps:$4 sm:$0xff]  }
  0x15   : > { %445 = vmatprep.subr.bf16.mxu0 %v2100_v13  ;;  %486 = vmatprep.subr.bf16.mxu1 %v2102_v14  ;;  %v2507_v27 = vld [vmem:[%s198_s4] sm:$0xf]  ;;  %v200_v28 = vld [vmem:[%s198_s4 + $0x4] sm:$0x3]  ;;  %v2129_v40 = vld [vmem:[%s2957_s1 + $0x1e8] ss:$16 sps:$4 sm:$0xff]  }
  0x16   : > { %v2510_v29 = vcombine.low %v2507_v27, %v200_v28  ;;  %v2133_v41 = vld [vmem:[%s2957_s1 + $0x4] ss:$16 sps:$4 sm:$0xff]   ;;  %v2136_v42 = vld [vmem:[%s2957_s1 + $0xc] ss:$16 sps:$4 sm:$0xff]   ;;  %v2131_v45 = vld [vmem:[%s2957_s1] ss:$16 sps:$4 sm:$0xff]  }
  0x17   : > { %v2134_v46 = vld [vmem:[%s2957_s1 + $0x8] ss:$16 sps:$4 sm:$0xff]   ;;  %v2139_v47 = vld [vmem:[%s2957_s1 + $0x24] ss:$16 sps:$4 sm:$0xff]   ;;  %v2142_v48 = vld [vmem:[%s2957_s1 + $0x2c] ss:$16 sps:$4 sm:$0xff]  }
  0x18   : > { %446 = vmatpush1.bf16.msra.mxu0 %v2104_v15  ;;  %487 = vmatpush1.bf16.msra.mxu1 %v2105_v16  ;;  %v272_v33 = vshrl.u32 %v2510_v29, 16  ;;  %v274_v34 = vshll.u32 %v2510_v29, 16  ;;  %v2137_v49 = vld [vmem:[%s2957_s1 + $0x20] ss:$16 sps:$4 sm:$0xff]   ;;  %v2140_v50 = vld [vmem:[%s2957_s1 + $0x28] ss:$16 sps:$4 sm:$0xff]  }
  0x19   : > { %447 = vmatprep.subr.bf16.mxu0 %v2106_v17  ;;  %488 = vmatprep.subr.bf16.mxu1 %v2108_v18  ;;  %v2145_v51 = vld [vmem:[%s2957_s1 + $0x44] ss:$16 sps:$4 sm:$0xff]   ;;  %v2148_v52 = vld [vmem:[%s2957_s1 + $0x4c] ss:$16 sps:$4 sm:$0xff]   ;;  %v2143_v53 = vld [vmem:[%s2957_s1 + $0x40] ss:$16 sps:$4 sm:$0xff]  }
  0x1a   : > { %v1077_v36 = vrot.slane %v272_v33, 1  ;;  %v276_v38 = vrot.slane %v274_v34, 1  ;;  %v1078_v39 = vrot.slane %v274_v34, 2  ;;  %v2146_v54 = vld [vmem:[%s2957_s1 + $0x48] ss:$16 sps:$4 sm:$0xff]   ;;  %s1744_s27 = sshll.u32 %s2973_s12, 2 }
  0x1b   : > { %v2151_v55 = vld [vmem:[%s2957_s1 + $0x64] ss:$16 sps:$4 sm:$0xff]   ;;  %v2154_v56 = vld [vmem:[%s2957_s1 + $0x6c] ss:$16 sps:$4 sm:$0xff]   ;;  %v2149_v57 = vld [vmem:[%s2957_s1 + $0x60] ss:$16 sps:$4 sm:$0xff]  }
  0x1c   : > { %448 = vmatpush1.bf16.msra.mxu0 %v2110_v19  ;;  %489 = vmatpush1.bf16.msra.mxu1 %v2111_v20  ;;  %v2538_v43 = vor.u32 %v1078_v39, %v1077_v36  ;;  %v277_v44 = vor.u32 %v276_v38, %v272_v33  ;;  %v2152_v58 = vld [vmem:[%s2957_s1 + $0x68] ss:$16 sps:$4 sm:$0xff]   ;;  %v2157_v59 = vld [vmem:[%s2957_s1 + $0x84] ss:$16 sps:$4 sm:$0xff]   ;;  %v2160_v60 = vld [vmem:[%s2957_s1 + $0x8c] ss:$16 sps:$4 sm:$0xff]  }
  0x1d   : > { %449 = vmatprep.subr.bf16.mxu0 %v2112_v21  ;;  %490 = vmatprep.subr.bf16.mxu1 %v2114_v22  ;;  %v2155_v61 = vld [vmem:[%s2957_s1 + $0x80] ss:$16 sps:$4 sm:$0xff]   ;;  %v2158_v62 = vld [vmem:[%s2957_s1 + $0x88] ss:$16 sps:$4 sm:$0xff]   ;;  %v2163_v63 = vld [vmem:[%s2957_s1 + $0xa4] ss:$16 sps:$4 sm:$0xff]  }
  0x1e   : > { %v2166_v0 = vld [vmem:[%s2957_s1 + $0xac] ss:$16 sps:$4 sm:$0xff]   ;;  %v2161_v1 = vld [vmem:[%s2957_s1 + $0xa0] ss:$16 sps:$4 sm:$0xff]   ;;  %v2164_v3 = vld [vmem:[%s2957_s1 + $0xa8] ss:$16 sps:$4 sm:$0xff]  }
  0x1f   : > { %v2169_v4 = vld [vmem:[%s2957_s1 + $0xc4] ss:$16 sps:$4 sm:$0xff]   ;;  %v2172_v5 = vld [vmem:[%s2957_s1 + $0xcc] ss:$16 sps:$4 sm:$0xff]   ;;  %v2167_v6 = vld [vmem:[%s2957_s1 + $0xc0] ss:$16 sps:$4 sm:$0xff]  }
  0x20   : > { %450 = vmatpush1.bf16.msra.mxu0 %v2116_v23  ;;  %491 = vmatpush1.bf16.msra.mxu1 %v2117_v24  ;;  %v2170_v7 = vld [vmem:[%s2957_s1 + $0xc8] ss:$16 sps:$4 sm:$0xff]   ;;  %v2175_v8 = vld [vmem:[%s2957_s1 + $0xe4] ss:$16 sps:$4 sm:$0xff]   ;;  %v2178_v9 = vld [vmem:[%s2957_s1 + $0xec] ss:$16 sps:$4 sm:$0xff]  }
  0x21   : > { %451 = vmatprep.subr.bf16.mxu0 %v2118_v25  ;;  %492 = vmatprep.subr.bf16.mxu1 %v2120_v26  ;;  %v2173_v10 = vld [vmem:[%s2957_s1 + $0xe0] ss:$16 sps:$4 sm:$0xff]   ;;  %v2176_v11 = vld [vmem:[%s2957_s1 + $0xe8] ss:$16 sps:$4 sm:$0xff]   ;;  %v2181_v12 = vld [vmem:[%s2957_s1 + $0x204] ss:$16 sps:$4 sm:$0xff]  }
  0x22   : > { %v2184_v13 = vld [vmem:[%s2957_s1 + $0x20c] ss:$16 sps:$4 sm:$0xff]   ;;  %v2179_v14 = vld [vmem:[%s2957_s1 + $0x200] ss:$16 sps:$4 sm:$0xff]   ;;  %v2182_v15 = vld [vmem:[%s2957_s1 + $0x208] ss:$16 sps:$4 sm:$0xff]  }
  0x23   : > { %v2187_v16 = vld [vmem:[%s2957_s1 + $0x224] ss:$16 sps:$4 sm:$0xff]   ;;  %v2190_v17 = vld [vmem:[%s2957_s1 + $0x22c] ss:$16 sps:$4 sm:$0xff]   ;;  %v2185_v18 = vld [vmem:[%s2957_s1 + $0x220] ss:$16 sps:$4 sm:$0xff]  }
  0x24   : > { %452 = vmatpush1.bf16.msra.mxu0 %v2122_v30  ;;  %493 = vmatpush1.bf16.msra.mxu1 %v2123_v31  ;;  %v2188_v19 = vld [vmem:[%s2957_s1 + $0x228] ss:$16 sps:$4 sm:$0xff]   ;;  %v2193_v20 = vld [vmem:[%s2957_s1 + $0x244] ss:$16 sps:$4 sm:$0xff]   ;;  %v2196_v21 = vld [vmem:[%s2957_s1 + $0x24c] ss:$16 sps:$4 sm:$0xff]  }
  0x25   : > { %453 = vmatprep.subr.bf16.mxu0 %v2124_v32  ;;  %494 = vmatprep.subr.bf16.mxu1 %v2126_v35  ;;  %v2191_v22 = vld [vmem:[%s2957_s1 + $0x240] ss:$16 sps:$4 sm:$0xff]   ;;  %v2194_v23 = vld [vmem:[%s2957_s1 + $0x248] ss:$16 sps:$4 sm:$0xff]   ;;  %v2199_v24 = vld [vmem:[%s2957_s1 + $0x264] ss:$16 sps:$4 sm:$0xff]  }
  0x26   : > { %v2202_v25 = vld [vmem:[%s2957_s1 + $0x26c] ss:$16 sps:$4 sm:$0xff]   ;;  %v2197_v26 = vld [vmem:[%s2957_s1 + $0x260] ss:$16 sps:$4 sm:$0xff]   ;;  %v2205_v28 = vld [vmem:[%s2957_s1 + $0x284] ss:$16 sps:$4 sm:$0xff]  }
  0x27   : > { %v2208_v30 = vld [vmem:[%s2957_s1 + $0x28c] ss:$16 sps:$4 sm:$0xff]   ;;  %v2203_v31 = vld [vmem:[%s2957_s1 + $0x280] ss:$16 sps:$4 sm:$0xff]   ;;  %v2206_v32 = vld [vmem:[%s2957_s1 + $0x288] ss:$16 sps:$4 sm:$0xff]  }
  0x28   : > { %454 = vmatpush1.bf16.msra.mxu0 %v2128_v37  ;;  %495 = vmatpush1.bf16.msra.mxu1 %v2129_v40  ;;  %v2211_v33 = vld [vmem:[%s2957_s1 + $0x2a4] ss:$16 sps:$4 sm:$0xff]   ;;  %v2214_v34 = vld [vmem:[%s2957_s1 + $0x2ac] ss:$16 sps:$4 sm:$0xff]   ;;  %v2209_v35 = vld [vmem:[%s2957_s1 + $0x2a0] ss:$16 sps:$4 sm:$0xff]  }
  0x29   : > { %681 = vmatprep.subr.bf16.mxu0 %v2133_v41  ;;  %722 = vmatprep.subr.bf16.mxu1 %v2136_v42  ;;  %v2212_v36 = vld [vmem:[%s2957_s1 + $0x2a8] ss:$16 sps:$4 sm:$0xff]   ;;  %v2217_v37 = vld [vmem:[%s2957_s1 + $0x2c4] ss:$16 sps:$4 sm:$0xff]   ;;  %v2220_v38 = vld [vmem:[%s2957_s1 + $0x2cc] ss:$16 sps:$4 sm:$0xff]  }
  0x2a   : > { %v2215_v39 = vld [vmem:[%s2957_s1 + $0x2c0] ss:$16 sps:$4 sm:$0xff]   ;;  %v2218_v40 = vld [vmem:[%s2957_s1 + $0x2c8] ss:$16 sps:$4 sm:$0xff]   ;;  %v2223_v41 = vld [vmem:[%s2957_s1 + $0x2e4] ss:$16 sps:$4 sm:$0xff]  }
  0x2b   : > { %472 = vmatmul.mubr.bf16.vlgmr.msra.gmra.mrb[0].mxu0 %v277_v44  ;;  %513 = vmatmul.mubr.bf16.vlgmr.msra.gmra.mrb[0].mxu1 %v277_v44  ;;  %v2226_v42 = vld [vmem:[%s2957_s1 + $0x2ec] ss:$16 sps:$4 sm:$0xff]   ;;  %v2221_v44 = vld [vmem:[%s2957_s1 + $0x2e0] ss:$16 sps:$4 sm:$0xff]   ;;  %s1745_s28 = sshll.u32 %s2971_s13, 3 }
  0x2c   : > { %682 = vmatpush1.bf16.msra.mxu0 %v2131_v45  ;;  %723 = vmatpush1.bf16.msra.mxu1 %v2134_v46  ;;  %v2224_v45 = vld [vmem:[%s2957_s1 + $0x2e8] ss:$16 sps:$4 sm:$0xff]   ;;  %v2229_v46 = vld [vmem:[%s2957_s1 + $0x304] ss:$16 sps:$4 sm:$0xff]   ;;  %s190_s5 = sadd.s32 %s1745_s28, %s1744_s27 }
  0x2d   : > { %683 = vmatprep.subr.bf16.mxu0 %v2139_v47  ;;  %724 = vmatprep.subr.bf16.mxu1 %v2142_v48  ;;  %v2232_v47 = vld [vmem:[%s2957_s1 + $0x30c] ss:$16 sps:$4 sm:$0xff]   ;;  %v796_v48 = vrot.slane %v2510_v29, 1  ;;  %s1746_s6 = sshll.u32 %s190_s5, 3 }
  0x2e   : > { %713 = vmatprep.mubr.bf16.mxu0 %v2363_v2  ;;  %754 = vmatprep.mubr.bf16.mxu1 %v2363_v2  ;;  %s192_s30 = scalar_lea.vmem %s2959_s3, %s1746_s6 }
  0x30   : > { %684 = vmatpush1.bf16.msra.mxu0 %v2137_v49  ;;  %725 = vmatpush1.bf16.msra.mxu1 %v2140_v50  ;;  %v2227_v49 = vld [vmem:[%s2957_s1 + $0x300] ss:$16 sps:$4 sm:$0xff]   ;;  %v2230_v50 = vld [vmem:[%s2957_s1 + $0x308] ss:$16 sps:$4 sm:$0xff]  }
  0x31   : > { %685 = vmatprep.subr.bf16.mxu0 %v2145_v51  ;;  %726 = vmatprep.subr.bf16.mxu1 %v2148_v52  ;;  %v2235_v51 = vld [vmem:[%s2957_s1 + $0x324] ss:$16 sps:$4 sm:$0xff]   ;;  %v2238_v52 = vld [vmem:[%s2957_s1 + $0x32c] ss:$16 sps:$4 sm:$0xff]  }
  0x34   : > { %686 = vmatpush1.bf16.msra.mxu0 %v2143_v53  ;;  %727 = vmatpush1.bf16.msra.mxu1 %v2146_v54  ;;  %v2233_v53 = vld [vmem:[%s2957_s1 + $0x320] ss:$16 sps:$4 sm:$0xff]   ;;  %v2236_v54 = vld [vmem:[%s2957_s1 + $0x328] ss:$16 sps:$4 sm:$0xff]  }
  0x35   : > { %687 = vmatprep.subr.bf16.mxu0 %v2151_v55  ;;  %728 = vmatprep.subr.bf16.mxu1 %v2154_v56  ;;  %v2241_v55 = vld [vmem:[%s2957_s1 + $0x344] ss:$16 sps:$4 sm:$0xff]   ;;  %v2244_v56 = vld [vmem:[%s2957_s1 + $0x34c] ss:$16 sps:$4 sm:$0xff]  }
  0x38   : > { %688 = vmatpush1.bf16.msra.mxu0 %v2149_v57  ;;  %729 = vmatpush1.bf16.msra.mxu1 %v2152_v58  ;;  %v2239_v57 = vld [vmem:[%s2957_s1 + $0x340] ss:$16 sps:$4 sm:$0xff]   ;;  %v2242_v58 = vld [vmem:[%s2957_s1 + $0x348] ss:$16 sps:$4 sm:$0xff]  }
  0x39   : > { %689 = vmatprep.subr.bf16.mxu0 %v2157_v59  ;;  %730 = vmatprep.subr.bf16.mxu1 %v2160_v60  ;;  %v2247_v59 = vld [vmem:[%s2957_s1 + $0x364] ss:$16 sps:$4 sm:$0xff]   ;;  %v2250_v60 = vld [vmem:[%s2957_s1 + $0x36c] ss:$16 sps:$4 sm:$0xff]  }
  0x3c   : > { %690 = vmatpush1.bf16.msra.mxu0 %v2155_v61  ;;  %731 = vmatpush1.bf16.msra.mxu1 %v2158_v62  ;;  %v2245_v61 = vld [vmem:[%s2957_s1 + $0x360] ss:$16 sps:$4 sm:$0xff]   ;;  %v2248_v62 = vld [vmem:[%s2957_s1 + $0x368] ss:$16 sps:$4 sm:$0xff]  }
  0x3d   : > { %691 = vmatprep.subr.bf16.mxu0 %v2163_v63  ;;  %732 = vmatprep.subr.bf16.mxu1 %v2166_v0  ;;  %v2253_v63 = vld [vmem:[%s2957_s1 + $0x384] ss:$16 sps:$4 sm:$0xff]   ;;  %v2256_v0 = vld [vmem:[%s2957_s1 + $0x38c] ss:$16 sps:$4 sm:$0xff]  }
  0x40   : > { %692 = vmatpush1.bf16.msra.mxu0 %v2161_v1  ;;  %733 = vmatpush1.bf16.msra.mxu1 %v2164_v3  ;;  %v2251_v1 = vld [vmem:[%s2957_s1 + $0x380] ss:$16 sps:$4 sm:$0xff]   ;;  %v2254_v3 = vld [vmem:[%s2957_s1 + $0x388] ss:$16 sps:$4 sm:$0xff]  }
  0x41   : > { %693 = vmatprep.subr.bf16.mxu0 %v2169_v4  ;;  %734 = vmatprep.subr.bf16.mxu1 %v2172_v5  ;;  %v2259_v4 = vld [vmem:[%s2957_s1 + $0x3a4] ss:$16 sps:$4 sm:$0xff]   ;;  %v2262_v5 = vld [vmem:[%s2957_s1 + $0x3ac] ss:$16 sps:$4 sm:$0xff]  }
  0x44   : > { %694 = vmatpush1.bf16.msra.mxu0 %v2167_v6  ;;  %735 = vmatpush1.bf16.msra.mxu1 %v2170_v7  ;;  %v2257_v6 = vld [vmem:[%s2957_s1 + $0x3a0] ss:$16 sps:$4 sm:$0xff]   ;;  %v2260_v7 = vld [vmem:[%s2957_s1 + $0x3a8] ss:$16 sps:$4 sm:$0xff]  }
  0x45   : > { %695 = vmatprep.subr.bf16.mxu0 %v2175_v8  ;;  %736 = vmatprep.subr.bf16.mxu1 %v2178_v9  ;;  %v2265_v8 = vld [vmem:[%s2957_s1 + $0x3c4] ss:$16 sps:$4 sm:$0xff]   ;;  %v2268_v9 = vld [vmem:[%s2957_s1 + $0x3cc] ss:$16 sps:$4 sm:$0xff]  }
  0x48   : > { %696 = vmatpush1.bf16.msra.mxu0 %v2173_v10  ;;  %737 = vmatpush1.bf16.msra.mxu1 %v2176_v11  ;;  %v2263_v10 = vld [vmem:[%s2957_s1 + $0x3c0] ss:$16 sps:$4 sm:$0xff]   ;;  %v2266_v11 = vld [vmem:[%s2957_s1 + $0x3c8] ss:$16 sps:$4 sm:$0xff]  }
  0x49   : > { %958 = vmatprep.subr.bf16.mxu0 %v2181_v12  ;;  %999 = vmatprep.subr.bf16.mxu1 %v2184_v13  ;;  %v2271_v12 = vld [vmem:[%s2957_s1 + $0x3e4] ss:$16 sps:$4 sm:$0xff]   ;;  %v2274_v13 = vld [vmem:[%s2957_s1 + $0x3ec] ss:$16 sps:$4 sm:$0xff]  }
  0x4b   : > { %714 = vmatmul.mubr.bf16.vlgmr.msra.gmra.mrb[4].mxu0 %v2507_v27  ;;  %755 = vmatmul.mubr.bf16.vlgmr.msra.gmra.mrb[4].mxu1 %v2507_v27  ;;  %v2200_v27 = vld [vmem:[%s2957_s1 + $0x268] ss:$16 sps:$4 sm:$0xff]  }
  0x4c   : > { %959 = vmatpush1.bf16.msra.mxu0 %v2179_v14  ;;  %1000 = vmatpush1.bf16.msra.mxu1 %v2182_v15  ;;  %v2269_v14 = vld [vmem:[%s2957_s1 + $0x3e0] ss:$16 sps:$4 sm:$0xff]   ;;  %v2272_v15 = vld [vmem:[%s2957_s1 + $0x3e8] ss:$16 sps:$4 sm:$0xff]  }
  0x4d   : > { %960 = vmatprep.subr.bf16.mxu0 %v2187_v16  ;;  %1001 = vmatprep.subr.bf16.mxu1 %v2190_v17  ;;  %v2277_v16 = vld [vmem:[%s2957_s1 + $0x404] ss:$16 sps:$4 sm:$0xff]   ;;  %v2280_v17 = vld [vmem:[%s2957_s1 + $0x40c] ss:$16 sps:$4 sm:$0xff]  }
  0x4e   : > { %990 = vmatprep.mubr.bf16.mxu0 %v2363_v2  ;;  %1031 = vmatprep.mubr.bf16.mxu1 %v2363_v2 }
  0x50   : > { %961 = vmatpush1.bf16.msra.mxu0 %v2185_v18  ;;  %1002 = vmatpush1.bf16.msra.mxu1 %v2188_v19  ;;  %v2275_v18 = vld [vmem:[%s2957_s1 + $0x400] ss:$16 sps:$4 sm:$0xff]   ;;  %v2278_v19 = vld [vmem:[%s2957_s1 + $0x408] ss:$16 sps:$4 sm:$0xff]  }
  0x51   : > { %962 = vmatprep.subr.bf16.mxu0 %v2193_v20  ;;  %1003 = vmatprep.subr.bf16.mxu1 %v2196_v21  ;;  %v2283_v20 = vld [vmem:[%s2957_s1 + $0x424] ss:$16 sps:$4 sm:$0xff]   ;;  %v2286_v21 = vld [vmem:[%s2957_s1 + $0x42c] ss:$16 sps:$4 sm:$0xff]  }
  0x54   : > { %963 = vmatpush1.bf16.msra.mxu0 %v2191_v22  ;;  %1004 = vmatpush1.bf16.msra.mxu1 %v2194_v23  ;;  %v2281_v22 = vld [vmem:[%s2957_s1 + $0x420] ss:$16 sps:$4 sm:$0xff]   ;;  %v2284_v23 = vld [vmem:[%s2957_s1 + $0x428] ss:$16 sps:$4 sm:$0xff]  }
  0x55   : > { %964 = vmatprep.subr.bf16.mxu0 %v2199_v24  ;;  %1005 = vmatprep.subr.bf16.mxu1 %v2202_v25  ;;  %v2289_v24 = vld [vmem:[%s2957_s1 + $0x444] ss:$16 sps:$4 sm:$0xff]   ;;  %v2287_v25 = vld [vmem:[%s2957_s1 + $0x440] ss:$16 sps:$4 sm:$0xff]  }
  0x58   : > { %965 = vmatpush1.bf16.msra.mxu0 %v2197_v26  ;;  %1006 = vmatpush1.bf16.msra.mxu1 %v2200_v27  ;;  %v2290_v26 = vld [vmem:[%s2957_s1 + $0x448] ss:$16 sps:$4 sm:$0xff]   ;;  %v2295_v27 = vld [vmem:[%s2957_s1 + $0x464] ss:$16 sps:$4 sm:$0xff]  }
  0x59   : > { %966 = vmatprep.subr.bf16.mxu0 %v2205_v28  ;;  %1007 = vmatprep.subr.bf16.mxu1 %v2208_v30  ;;  %v2293_v28 = vld [vmem:[%s2957_s1 + $0x460] ss:$16 sps:$4 sm:$0xff]   ;;  %v2296_v30 = vld [vmem:[%s2957_s1 + $0x468] ss:$16 sps:$4 sm:$0xff]  }
  0x5c   : > { %967 = vmatpush1.bf16.msra.mxu0 %v2203_v31  ;;  %1008 = vmatpush1.bf16.msra.mxu1 %v2206_v32  ;;  %v2301_v31 = vld [vmem:[%s2957_s1 + $0x484] ss:$16 sps:$4 sm:$0xff]   ;;  %v2304_v32 = vld [vmem:[%s2957_s1 + $0x48c] ss:$16 sps:$4 sm:$0xff]  }
  0x5d   : > { %968 = vmatprep.subr.bf16.mxu0 %v2211_v33  ;;  %1009 = vmatprep.subr.bf16.mxu1 %v2214_v34  ;;  %v2299_v33 = vld [vmem:[%s2957_s1 + $0x480] ss:$16 sps:$4 sm:$0xff]   ;;  %v2302_v34 = vld [vmem:[%s2957_s1 + $0x488] ss:$16 sps:$4 sm:$0xff]  }
  0x60   : > { %969 = vmatpush1.bf16.msra.mxu0 %v2209_v35  ;;  %1010 = vmatpush1.bf16.msra.mxu1 %v2212_v36  ;;  %v2307_v35 = vld [vmem:[%s2957_s1 + $0x4a4] ss:$16 sps:$4 sm:$0xff]   ;;  %v2310_v36 = vld [vmem:[%s2957_s1 + $0x4ac] ss:$16 sps:$4 sm:$0xff]  }
  0x61   : > { %970 = vmatprep.subr.bf16.mxu0 %v2217_v37  ;;  %1011 = vmatprep.subr.bf16.mxu1 %v2220_v38  ;;  %v2305_v37 = vld [vmem:[%s2957_s1 + $0x4a0] ss:$16 sps:$4 sm:$0xff]   ;;  %v2308_v38 = vld [vmem:[%s2957_s1 + $0x4a8] ss:$16 sps:$4 sm:$0xff]  }
  0x64   : > { %971 = vmatpush1.bf16.msra.mxu0 %v2215_v39  ;;  %1012 = vmatpush1.bf16.msra.mxu1 %v2218_v40  ;;  %v2313_v39 = vld [vmem:[%s2957_s1 + $0x4c4] ss:$16 sps:$4 sm:$0xff]   ;;  %v2316_v40 = vld [vmem:[%s2957_s1 + $0x4cc] ss:$16 sps:$4 sm:$0xff]  }
  0x65   : > { %972 = vmatprep.subr.bf16.mxu0 %v2223_v41  ;;  %1013 = vmatprep.subr.bf16.mxu1 %v2226_v42  ;;  %v2311_v41 = vld [vmem:[%s2957_s1 + $0x4c0] ss:$16 sps:$4 sm:$0xff]   ;;  %v2314_v42 = vld [vmem:[%s2957_s1 + $0x4c8] ss:$16 sps:$4 sm:$0xff]  }
  0x68   : > { %973 = vmatpush1.bf16.msra.mxu0 %v2221_v44  ;;  %1014 = vmatpush1.bf16.msra.mxu1 %v2224_v45  ;;  %v2319_v44 = vld [vmem:[%s2957_s1 + $0x4e4] ss:$16 sps:$4 sm:$0xff]   ;;  %v2322_v45 = vld [vmem:[%s2957_s1 + $0x4ec] ss:$16 sps:$4 sm:$0xff]  }
  0x69   : > { %1241 = vmatprep.subr.bf16.mxu0 %v2229_v46  ;;  %1282 = vmatprep.subr.bf16.mxu1 %v2232_v47  ;;  %v2317_v46 = vld [vmem:[%s2957_s1 + $0x4e0] ss:$16 sps:$4 sm:$0xff]   ;;  %v2320_v47 = vld [vmem:[%s2957_s1 + $0x4e8] ss:$16 sps:$4 sm:$0xff]  }
  0x6b   : > { %991 = vmatmul.mubr.bf16.vlgmr.msra.gmra.mrb[8].mxu0 %v796_v48  ;;  %1032 = vmatmul.mubr.bf16.vlgmr.msra.gmra.mrb[8].mxu1 %v796_v48  ;;  %v1360_v48 = vrot.slane %v2510_v29, 2 }
  0x6c   : > { %1242 = vmatpush1.bf16.msra.mxu0 %v2227_v49  ;;  %1283 = vmatpush1.bf16.msra.mxu1 %v2230_v50 }
  0x6d   : > { %1243 = vmatprep.subr.bf16.mxu0 %v2235_v51  ;;  %1284 = vmatprep.subr.bf16.mxu1 %v2238_v52 }
  0x6e   : > { %1273 = vmatprep.mubr.bf16.mxu0 %v2363_v2  ;;  %1314 = vmatprep.mubr.bf16.mxu1 %v2363_v2 }
  0x70   : > { %1244 = vmatpush1.bf16.msra.mxu0 %v2233_v53  ;;  %1285 = vmatpush1.bf16.msra.mxu1 %v2236_v54 }
  0x71   : > { %1245 = vmatprep.subr.bf16.mxu0 %v2241_v55  ;;  %1286 = vmatprep.subr.bf16.mxu1 %v2244_v56 }
  0x74   : > { %1246 = vmatpush1.bf16.msra.mxu0 %v2239_v57  ;;  %1287 = vmatpush1.bf16.msra.mxu1 %v2242_v58 }
  0x75   : > { %1247 = vmatprep.subr.bf16.mxu0 %v2247_v59  ;;  %1288 = vmatprep.subr.bf16.mxu1 %v2250_v60 }
  0x78   : > { %1248 = vmatpush1.bf16.msra.mxu0 %v2245_v61  ;;  %1289 = vmatpush1.bf16.msra.mxu1 %v2248_v62 }
  0x79   : > { %1249 = vmatprep.subr.bf16.mxu0 %v2253_v63  ;;  %1290 = vmatprep.subr.bf16.mxu1 %v2256_v0 }
  0x7c   : > { %1250 = vmatpush1.bf16.msra.mxu0 %v2251_v1  ;;  %1291 = vmatpush1.bf16.msra.mxu1 %v2254_v3 }
  0x7d   : > { %1251 = vmatprep.subr.bf16.mxu0 %v2259_v4  ;;  %1292 = vmatprep.subr.bf16.mxu1 %v2262_v5 }
  0x80   : > { %1252 = vmatpush1.bf16.msra.mxu0 %v2257_v6  ;;  %1293 = vmatpush1.bf16.msra.mxu1 %v2260_v7 }
  0x81   : > { %1253 = vmatprep.subr.bf16.mxu0 %v2265_v8  ;;  %1294 = vmatprep.subr.bf16.mxu1 %v2268_v9 }
  0x84   : > { %1254 = vmatpush1.bf16.msra.mxu0 %v2263_v10  ;;  %1295 = vmatpush1.bf16.msra.mxu1 %v2266_v11 }
  0x85   : > { %1255 = vmatprep.subr.bf16.mxu0 %v2271_v12  ;;  %1296 = vmatprep.subr.bf16.mxu1 %v2274_v13 }
  0x88   : > { %1256 = vmatpush1.bf16.msra.mxu0 %v2269_v14  ;;  %1297 = vmatpush1.bf16.msra.mxu1 %v2272_v15 }
  0x89   : > { %1522 = vmatprep.subr.bf16.mxu0 %v2277_v16  ;;  %1563 = vmatprep.subr.bf16.mxu1 %v2280_v17 }
  0x8b   : > { %1274 = vmatmul.mubr.bf16.vlgmr.msra.gmra.mrb[12].mxu0 %v2538_v43  ;;  %1315 = vmatmul.mubr.bf16.vlgmr.msra.gmra.mrb[12].mxu1 %v2538_v43  ;;  %v2292_v43 = vld [vmem:[%s2957_s1 + $0x44c] ss:$16 sps:$4 sm:$0xff]  }
  0x8c   : > { %1523 = vmatpush1.bf16.msra.mxu0 %v2275_v18  ;;  %1564 = vmatpush1.bf16.msra.mxu1 %v2278_v19 }
  0x8d   : > { %1524 = vmatprep.subr.bf16.mxu0 %v2283_v20  ;;  %1565 = vmatprep.subr.bf16.mxu1 %v2286_v21 }
  0x8e   : > { %1554 = vmatprep.mubr.bf16.mxu0 %v2363_v2  ;;  %1595 = vmatprep.mubr.bf16.mxu1 %v2363_v2  ;;  %v2298_v2 = vld [vmem:[%s2957_s1 + $0x46c] ss:$16 sps:$4 sm:$0xff]  }
  0x90   : > { %1525 = vmatpush1.bf16.msra.mxu0 %v2281_v22  ;;  %1566 = vmatpush1.bf16.msra.mxu1 %v2284_v23 }
  0x91   : > { %1526 = vmatprep.subr.bf16.mxu0 %v2289_v24  ;;  %1567 = vmatprep.subr.bf16.mxu1 %v2292_v43 }
  0x94   : > { %1527 = vmatpush1.bf16.msra.mxu0 %v2287_v25  ;;  %1568 = vmatpush1.bf16.msra.mxu1 %v2290_v26 }
  0x95   : > { %1528 = vmatprep.subr.bf16.mxu0 %v2295_v27  ;;  %1569 = vmatprep.subr.bf16.mxu1 %v2298_v2  ;;  %v1610_v2 = vlaneseq }
  0x98   : > { %1529 = vmatpush1.bf16.msra.mxu0 %v2293_v28  ;;  %1570 = vmatpush1.bf16.msra.mxu1 %v2296_v30  ;;  %v1611_v28 = vshrl.u32 %v1610_v2, 7 }
  0x99   : > { %1530 = vmatprep.subr.bf16.mxu0 %v2301_v31  ;;  %1571 = vmatprep.subr.bf16.mxu1 %v2304_v32  ;;  %v1608_v32 = vld [vmem:[%s2958_s2] sm:$0xf] }
  0x9a   : > { %v1612_v30 = vsub.s32 0, %v1611_v28  ;;  %v1620_v31 = vsub.s32 2, %v1611_v28 }
  0x9c   : > { %1531 = vmatpush1.bf16.msra.mxu0 %v2299_v33  ;;  %1572 = vmatpush1.bf16.msra.mxu1 %v2302_v34  ;;  %v1616_v33 = vsub.s32 1, %v1611_v28  ;;  %v1624_v34 = vsub.s32 3, %v1611_v28 }
  0x9d   : > { %1532 = vmatprep.subr.bf16.mxu0 %v2307_v35  ;;  %1573 = vmatprep.subr.bf16.mxu1 %v2310_v36  ;;  %v1613_v35 = vrot.slane %v1608_v32, %v1612_v30  ;;  %v1621_v36 = vrot.slane %v1608_v32, %v1620_v31 }
  0xa0   : > { %1533 = vmatpush1.bf16.msra.mxu0 %v2305_v37  ;;  %1574 = vmatpush1.bf16.msra.mxu1 %v2308_v38 }
  0xa1   : > { %1534 = vmatprep.subr.bf16.mxu0 %v2313_v39  ;;  %1575 = vmatprep.subr.bf16.mxu1 %v2316_v40  ;;  %v1617_v39 = vrot.slane %v1608_v32, %v1616_v33  ;;  %v1625_v40 = vrot.slane %v1608_v32, %v1624_v34 }
  0xa4   : > { %1535 = vmatpush1.bf16.msra.mxu0 %v2311_v41  ;;  %1576 = vmatpush1.bf16.msra.mxu1 %v2314_v42 }
  0xa5   : > { %1536 = vmatprep.subr.bf16.mxu0 %v2319_v44  ;;  %1577 = vmatprep.subr.bf16.mxu1 %v2322_v45 }
  0xa8   : > { %1537 = vmatpush1.bf16.msra.mxu0 %v2317_v46  ;;  %1578 = vmatpush1.bf16.msra.mxu1 %v2320_v47 }
  0xab   : > { %1555 = vmatmul.mubr.bf16.vlgmr.msra.gmra.mrb[16].mxu0 %v1360_v48  ;;  %1596 = vmatmul.mubr.bf16.vlgmr.msra.gmra.mrb[16].mxu1 %v1360_v48 }
  0xfe   : > { %v473_v49 = vpop.f32.mrb[0].mxu0  ;;  %v514_v50 = vpop.f32.mrb[0].mxu1 }
  0xff   : > { %v475_v51 = vpop.f32.mrb[1].mxu0  ;;  %v516_v52 = vpop.f32.mrb[1].mxu1 }
 0x100   : > { %v477_v53 = vpop.f32.mrb[2].mxu0  ;;  %v518_v54 = vpop.f32.mrb[2].mxu1 }
 0x101   : > { %v478_v55 = vpop.f32.mrb[3].mxu0  ;;  %v519_v56 = vpop.f32.mrb[3].mxu1 }
 0x11e   : > { %v715_v57 = vpop.f32.mrb[4].mxu0  ;;  %v756_v58 = vpop.f32.mrb[4].mxu1 }
 0x11f   : > { %v716_v59 = vadd.f32 %v715_v57, %v473_v49  ;;  %v757_v60 = vadd.f32 %v756_v58, %v514_v50  ;;  %v717_v61 = vpop.f32.mrb[5].mxu0  ;;  %v758_v62 = vpop.f32.mrb[5].mxu1 }
 0x120   : > { %v718_v63 = vadd.f32 %v717_v61, %v475_v51  ;;  %v759_v29 = vadd.f32 %v758_v62, %v516_v52  ;;  %v719_v0 = vpop.f32.mrb[6].mxu0  ;;  %v760_v1 = vpop.f32.mrb[6].mxu1 }
 0x121   : > { %v720_v3 = vpop.f32.mrb[7].mxu0  ;;  %v761_v4 = vpop.f32.mrb[7].mxu1 }
 0x13e   : > { %v992_v5 = vpop.f32.mrb[8].mxu0  ;;  %v1033_v6 = vpop.f32.mrb[8].mxu1 }
 0x13f   : > { %v1040_v7 = vadd.f32 %v992_v5, %v716_v59  ;;  %v1042_v8 = vadd.f32 %v1033_v6, %v757_v60  ;;  %v994_v9 = vpop.f32.mrb[9].mxu0  ;;  %v1035_v10 = vpop.f32.mrb[9].mxu1 }
 0x140   : > { %v1041_v11 = vadd.f32 %v994_v9, %v718_v63  ;;  %v1043_v12 = vadd.f32 %v1035_v10, %v759_v29  ;;  %v996_v13 = vpop.f32.mrb[10].mxu0  ;;  %v1037_v14 = vpop.f32.mrb[10].mxu1 }
 0x141   : > { %v997_v15 = vpop.f32.mrb[11].mxu0  ;;  %v1038_v16 = vpop.f32.mrb[11].mxu1 }
 0x15e   : > { %v1275_v17 = vpop.f32.mrb[12].mxu0  ;;  %v1316_v18 = vpop.f32.mrb[12].mxu1 }
 0x15f   : > { %v1323_v19 = vadd.f32 %v1275_v17, %v1040_v7  ;;  %v1325_v20 = vadd.f32 %v1316_v18, %v1042_v8  ;;  %v1277_v21 = vpop.f32.mrb[13].mxu0  ;;  %v1318_v22 = vpop.f32.mrb[13].mxu1 }
 0x160   : > { %v1324_v23 = vadd.f32 %v1277_v21, %v1041_v11  ;;  %v1326_v24 = vadd.f32 %v1318_v22, %v1043_v12  ;;  %v1279_v43 = vpop.f32.mrb[14].mxu0  ;;  %v1320_v25 = vpop.f32.mrb[14].mxu1 }
 0x161   : > { %v1280_v26 = vpop.f32.mrb[15].mxu0  ;;  %v1321_v27 = vpop.f32.mrb[15].mxu1 }
 0x17e   : > { %v1556_v37 = vpop.f32.mrb[16].mxu0  ;;  %v1597_v38 = vpop.f32.mrb[16].mxu1 }
 0x17f   : > { %v1604_v41 = vadd.f32 %v1556_v37, %v1323_v19  ;;  %v1606_v42 = vadd.f32 %v1597_v38, %v1325_v20  ;;  %v1558_v44 = vpop.f32.mrb[17].mxu0  ;;  %v1599_v45 = vpop.f32.mrb[17].mxu1 }
 0x180   : > { %v1605_v46 = vadd.f32 %v1558_v44, %v1324_v23  ;;  %v1607_v47 = vadd.f32 %v1599_v45, %v1326_v24  ;;  %v1560_v48 = vpop.f32.mrb[18].mxu0  ;;  %v1601_v49 = vpop.f32.mrb[18].mxu1 }
 0x181   : > { %v1630_v50 = vadd.f32 %v1613_v35, %v1604_v41  ;;  %v1632_v51 = vadd.f32 %v1621_v36, %v1606_v42  ;;  %v1561_v52 = vpop.f32.mrb[19].mxu0  ;;  %v1602_v53 = vpop.f32.mrb[19].mxu1 }
 0x182   : > { %v1631_v54 = vadd.f32 %v1617_v39, %v1605_v46  ;;  %v1633_v55 = vadd.f32 %v1625_v40, %v1607_v47 }
 0x183   : > { %vm1634_vm0 = vcmp.gt.f32.partialorder %v1630_v50, 0.0  ;;  %v1638_v56 = vmul.f32 0.01, %v1630_v50  ;;  %vm1636_vm1 = vcmp.gt.f32.partialorder %v1632_v51, 0.0  ;;  %v1640_v57 = vmul.f32 0.01, %v1632_v51 }
 0x184   : > { %vm1635_vm2 = vcmp.gt.f32.partialorder %v1631_v54, 0.0  ;;  %v1639_v58 = vmul.f32 0.01, %v1631_v54  ;;  %vm1637_vm3 = vcmp.gt.f32.partialorder %v1633_v55, 0.0  ;;  %v1641_v59 = vmul.f32 0.01, %v1633_v55 }
 0x185   : > { %v1642_v60 = vsel %vm1634_vm0, %v1630_v50, %v1638_v56  ;;  %v1644_v61 = vsel %vm1636_vm1, %v1632_v51, %v1640_v57 }
 0x186   : > { %1646 = vst [vmem:[%s192_s30] sm:$0xff] %v1642_v60  ;;  %1648 = vst [vmem:[%s192_s30 + $0x10] sm:$0xff] %v1644_v61  ;;  %v1643_v62 = vsel %vm1635_vm2, %v1631_v54, %v1639_v58  ;;  %v1645_v63 = vsel %vm1637_vm3, %v1633_v55, %v1641_v59 }
 0x187   : > { %1647 = vst [vmem:[%s192_s30 + $0x8] sm:$0xff] %v1643_v62  ;;  %1649 = vst [vmem:[%s192_s30 + $0x18] sm:$0xff] %v1645_v63 }
 0x188 PF: > { %s13_s16 = sadd.s32 1, %s2361_s16   ;;  %s2960_s12 = smov %s2353_s14 }
 0x189   : > { %p10_p7 = scmp.ge.s32.totalorder %s13_s16, 6   ;;  %s2961_s13 = smov %s2357_s15 }
 0x18a   : > { %s2962_s14 = smov %s2965_s17  ;;  %s2963_s15 = smov %s2969_s18 }
 0x18b   :  { %12 = sbr.rel (!%p10_p7) target bundleno = 3 (0x3), region = 67 }

</bundles_post_ra>
